<compile_context>
chip_gen: v6e
topology: v6e:2x2x1
jax: 0.10.0
libtpu: 0.0.40
codegen_flags: <defaults>
</compile_context>

<pallas_src>
import functools

import jax
import jax.numpy as jnp
from jax import lax
from jax.experimental import pallas as pl
from jax.experimental.pallas import tpu as pltpu

LN_EPS = 1e-5  # torch.nn.LayerNorm default


def _round_up(x, m):
    return ((x + m - 1) // m) * m


# ---------------------------------------------------------------------------
# device introspection
# ---------------------------------------------------------------------------
def _device_kind():
    try:
        return jax.devices()[0].device_kind.lower()
    except Exception:
        return ""


def _lane_align(kind):
    # v6e / v7x MXUs are 256x256 -> align K/N edges to 256; older chips 128.
    if any(t in kind for t in ("v2", "v3", "v4", "v5")):
        return 128
    return 256


def _vmem_capacity_bytes(kind):
    # Per-TensorCore VMEM: v7x has 64 MiB per TC (2 TCs/chip); v5e/v6e 128 MiB.
    if "v7" in kind or "7x" in kind:
        return 64 * 1024 * 1024
    try:
        cap = int(pltpu.get_tpu_info().vmem_capacity_bytes)
        if cap > 0:
            return min(cap, 128 * 1024 * 1024)
    except Exception:
        pass
    return 128 * 1024 * 1024 if kind else 64 * 1024 * 1024


# ---------------------------------------------------------------------------
# VMEM budgeting / tiling plan
# ---------------------------------------------------------------------------
def _vmem_need(tile_n, tile_f, num_f, e_pad, io_bytes, comp_bytes):
    """Rough per-core VMEM requirement of one pipelined grid step."""
    need = 4 * tile_n * e_pad * io_bytes          # x + out, double-buffered
    need += tile_n * tile_f * 4                   # h intermediate (f32)
    need += 3 * e_pad * 4 + 2 * tile_f * 4        # b2/gamma/beta + b1 rows
    if num_f == 1:
        need += 2 * e_pad * tile_f * comp_bytes   # resident W1^T + W2^T (single buf)
    else:
        need += 4 * e_pad * tile_f * comp_bytes   # double-buffered weight chunks
        need += tile_n * e_pad * (4 + comp_bytes)  # f32 acc + compute-dtype x cast
    return need


def _select_plan(e_pad, f_pad, comp_bytes, budget, align, kind, fixed_tile_f=None):
    io_bytes = 4  # plan conservatively for f32 activations

    if fixed_tile_f is not None:
        tf = _round_up(min(fixed_tile_f, f_pad), 128)
        num_f = pl.cdiv(f_pad, tf)
        if num_f == 1:
            tf = f_pad
        for tn in (512, 384, 256, 128, 64, 32, 16, 8):
            if _vmem_need(tn, tf, num_f, e_pad, io_bytes, comp_bytes) <= budget:
                return tn, tf, num_f
        return 8, tf, num_f

    # 1) full weight residency: weights read from HBM exactly once per call.
    for tn in (512, 384, 256, 128, 64, 32, 16, 8):
        if _vmem_need(tn, f_pad, 1, e_pad, io_bytes, comp_bytes) <= budget:
            return tn, f_pad, 1

    # 2) stream F-chunks.  Keep tile_n high enough that streamed weights stay
    #    below the HBM roofline (arithmetic intensity ~ tile_n FLOP/byte):
    #    v6e needs ~640, v7x ~311 (per TC), v5e ~240.
    if "v6" in kind:
        stream_tns = (768, 640, 512, 384, 256, 128, 64, 32, 16, 8)
    elif "v7" in kind:
        stream_tns = (384, 512, 256, 128, 64, 32, 16, 8)
    else:
        stream_tns = (512, 384, 256, 128, 64, 32, 16, 8)
    for tn in stream_tns:
        max_nf = max(2, f_pad // align)
        for nf in range(2, max_nf + 1):
            tf = _round_up(pl.cdiv(f_pad, nf), align)
            if tf >= f_pad:
                continue
            num_f = pl.cdiv(f_pad, tf)
            if _vmem_need(tn, tf, num_f, e_pad, io_bytes, comp_bytes) <= budget:
                return tn, tf, num_f
    return 8, align, pl.cdiv(f_pad, align)


# ---------------------------------------------------------------------------
# one-time parameter preparation (hoisted out of the per-call hot path)
# ---------------------------------------------------------------------------
def prepare_ffn_params(w1, b1, w2, b2, gamma, beta, *,
                       compute_dtype=jnp.bfloat16,
                       tile_f=None, vmem_budget_bytes=None):
    """Pad / cast / transpose the torch-layout parameters once and pick a
    device-adaptive tiling plan.  w1: (F, E), b1: (F,), w2: (E, F),
    b2/gamma/beta: (E,)."""
    F, E = w1.shape
    assert w2.shape == (E, F)

    kind = _device_kind()
    align = _lane_align(kind)
    capacity = _vmem_capacity_bytes(kind)
    budget = (vmem_budget_bytes if vmem_budget_bytes is not None
              else int(0.70 * capacity))

    e_pad = _round_up(E, align)
    f_pad = _round_up(F, align)
    comp_bytes = jnp.dtype(compute_dtype).itemsize

    tile_n, tf, num_f = _select_plan(e_pad, f_pad, comp_bytes, budget, align,
                                     kind, fixed_tile_f=tile_f)
    f_pad = num_f * tf  # streamed chunks tile F exactly (zero-padded -> exact)

    # One-time pad + cast + transpose: kernel runs plain NN contractions.
    w1t = jnp.pad(w1, ((0, f_pad - F), (0, e_pad - E))).T.astype(compute_dtype)
    w2t = jnp.pad(w2, ((0, e_pad - E), (0, f_pad - F))).T.astype(compute_dtype)
    b1p = jnp.pad(b1, (0, f_pad - F)).reshape(1, f_pad).astype(jnp.float32)
    b2p = jnp.pad(b2, (0, e_pad - E)).reshape(1, e_pad).astype(jnp.float32)
    g_p = jnp.pad(gamma, (0, e_pad - E)).reshape(1, e_pad).astype(jnp.float32)
    be_p = jnp.pad(beta, (0, e_pad - E)).reshape(1, e_pad).astype(jnp.float32)

    return dict(E=E, F=F, e_pad=e_pad, f_pad=f_pad,
                tile_n=tile_n, tile_f=tf, num_f=num_f,
                compute_dtype=jnp.dtype(compute_dtype), capacity=capacity,
                w1t=w1t, b1=b1p, w2t=w2t, b2=b2p, gamma=g_p, beta=be_p)


# ---------------------------------------------------------------------------
# kernel
# ---------------------------------------------------------------------------
def _ffn_kernel(x_ref, w1_ref, b1_ref, w2_ref, b2_ref, g_ref, beta_ref,
                o_ref, *scratch, num_f, e_real, e_pad):
    comp = w1_ref.dtype

    def epilogue(acc):
        # y = FFN(x) + x ; padded embed columns of acc/b2/x are exactly zero.
        y = acc + b2_ref[...] + x_ref[...].astype(jnp.float32)
        inv_e = 1.0 / float(e_real)
        mu = jnp.sum(y, axis=-1, keepdims=True) * inv_e
        d = y - mu
        if e_pad != e_real:
            # mask padded columns so the mean-shifted two-pass variance is exact
            col = lax.broadcasted_iota(jnp.int32, d.shape, 1)
            d = jnp.where(col < e_real, d, 0.0)
        var = jnp.sum(d * d, axis=-1, keepdims=True) * inv_e
        y_hat = d * lax.rsqrt(var + LN_EPS)
        o_ref[...] = (y_hat * g_ref[...] + beta_ref[...]).astype(o_ref.dtype)

    if num_f == 1:
        # Fully resident weights: one fused step per token tile.
        xc = x_ref[...].astype(comp)
        h = jnp.dot(xc, w1_ref[...], preferred_element_type=jnp.float32)
        h = jnp.maximum(h + b1_ref[...], 0.0)
        # TODO(synk): relu_dropout has p=0.0 (identity); a stochastic version
        # would use pltpu.prng_seed + pltpu.stateful_bernoulli here.
        acc = jnp.dot(h.astype(comp), w2_ref[...],
                      preferred_element_type=jnp.float32)
        epilogue(acc)
    else:
        xc_ref, acc_ref = scratch
        f = pl.program_id(1)

        @pl.when(f == 0)
        def _cast_once():  # hoist the x cast out of the F loop
            xc_ref[...] = x_ref[...].astype(xc_ref.dtype)

        h = jnp.dot(xc_ref[...], w1_ref[...], preferred_element_type=jnp.float32)
        h = jnp.maximum(h + b1_ref[...], 0.0)
        part = jnp.dot(h.astype(comp), w2_ref[...],
                       preferred_element_type=jnp.float32)

        @pl.when(f == 0)
        def _first():  # direct store: no zero-fill + read-modify-write on step 0
            acc_ref[...] = part

        @pl.when(f > 0)
        def _rest():
            acc_ref[...] += part

        @pl.when(f == num_f - 1)
        def _last():
            epilogue(acc_ref[...])


# ---------------------------------------------------------------------------
# per-call wrapper
# ---------------------------------------------------------------------------
def positionwise_ffn(x, params):
    """Fused FFN + residual + LayerNorm.  x: (B, S, E)."""
    B, S, E = x.shape
    assert E == params["E"]
    e_pad, f_pad = params["e_pad"], params["f_pad"]
    tile_f, num_f = params["tile_f"], params["num_f"]
    comp = params["compute_dtype"]

    N = B * S
    tile_n = max(8, min(params["tile_n"], _round_up(N, 8)))
    n_pad = _round_up(N, tile_n)
    n_tiles = n_pad // tile_n

    x2 = jnp.pad(x.reshape(N, E), ((0, n_pad - N), (0, e_pad - E)))

    io_bytes = jnp.dtype(x.dtype).itemsize
    comp_bytes = comp.itemsize

    const = dict(pipeline_mode=pl.Buffered(1))  # constant-index operands: 1 buffer
    if num_f == 1:
        w1_spec = pl.BlockSpec((e_pad, f_pad), lambda i, f: (0, 0), **const)
        b1_spec = pl.BlockSpec((1, f_pad), lambda i, f: (0, 0), **const)
        w2_spec = pl.BlockSpec((f_pad, e_pad), lambda i, f: (0, 0), **const)
        scratch_shapes = []
    else:
        # streamed F-chunks: keep default double-buffering so DMA overlaps MXU
        w1_spec = pl.BlockSpec((e_pad, tile_f), lambda i, f: (0, f))
        b1_spec = pl.BlockSpec((1, tile_f), lambda i, f: (0, f))
        w2_spec = pl.BlockSpec((tile_f, e_pad), lambda i, f: (f, 0))
        scratch_shapes = [pltpu.VMEM((tile_n, e_pad), comp),        # x cast once
                          pltpu.VMEM((tile_n, e_pad), jnp.float32)]  # f32 acc

    def vec_spec():
        return pl.BlockSpec((1, e_pad), lambda i, f: (0, 0), **const)

    kernel = functools.partial(_ffn_kernel, num_f=num_f, e_real=E, e_pad=e_pad)

    # Weights are re-streamed once per token tile when num_f > 1 (and per TC
    # under megacore); read exactly once when fully resident.
    weight_passes = 1 if num_f == 1 else n_tiles
    cost = pl.CostEstimate(
        flops=int(4 * n_pad * e_pad * f_pad),
        transcendentals=int(n_pad),
        bytes_accessed=int(2 * n_pad * e_pad * io_bytes
                           + 2 * e_pad * f_pad * comp_bytes * weight_passes),
    )

    need = _vmem_need(tile_n, tile_f, num_f, e_pad, io_bytes, comp_bytes)
    vmem_limit = int(min(0.85 * params["capacity"],
                         max(need + (8 << 20), 32 << 20)))

    out2 = pl.pallas_call(
        kernel,
        out_shape=jax.ShapeDtypeStruct((n_pad, e_pad), x.dtype),
        grid_spec=pltpu.PrefetchScalarGridSpec(
            num_scalar_prefetch=0,
            grid=(n_tiles, num_f),
            in_specs=[
                pl.BlockSpec((tile_n, e_pad), lambda i, f: (i, 0)),  # x tile
                w1_spec, b1_spec, w2_spec,
                vec_spec(),   # b2
                vec_spec(),   # gamma
                vec_spec(),   # beta
            ],
            out_specs=pl.BlockSpec((tile_n, e_pad), lambda i, f: (i, 0)),
            scratch_shapes=scratch_shapes,
        ),
        compiler_params=pltpu.CompilerParams(
            dimension_semantics=("parallel", "arbitrary"),
            vmem_limit_bytes=vmem_limit,
        ),
        cost_estimate=cost,
    )(x2, params["w1t"], params["b1"], params["w2t"],
      params["b2"], params["gamma"], params["beta"])

    return out2[:N, :E].reshape(B, S, E)


# ---------------------------------------------------------------------------
# reference + test
# ---------------------------------------------------------------------------
def _reference(x, w1, b1, w2, b2, gamma, beta):
    h = jnp.maximum(x @ w1.T + b1, 0.0)
    y = h @ w2.T + b2 + x
    mu = jnp.mean(y, axis=-1, keepdims=True)
    var = jnp.mean(jnp.square(y - mu), axis=-1, keepdims=True)
    return (y - mu) / jnp.sqrt(var + LN_EPS) * gamma + beta


if __name__ == "__main__":
    B, S, E = 2, 8, 32
    F = 4 * E

    key = jax.random.PRNGKey(0)
    kx, k1, k2, k3, k4 = jax.random.split(key, 5)

    x = jax.random.normal(kx, (B, S, E), dtype=jnp.float32)
    # Deterministic, torch-Linear-shaped parameters (scaled for stability).
    w1 = jax.random.normal(k1, (F, E), dtype=jnp.float32) * (1.0 / jnp.sqrt(E))
    b1 = jax.random.normal(k2, (F,), dtype=jnp.float32) * 0.01
    w2 = jax.random.normal(k3, (E, F), dtype=jnp.float32) * (1.0 / jnp.sqrt(F))
    b2 = jax.random.normal(k4, (E,), dtype=jnp.float32) * 0.01
    gamma = jnp.ones((E,), dtype=jnp.float32)
    beta = jnp.zeros((E,), dtype=jnp.float32)

    ref = _reference(x, w1, b1, w2, b2, gamma, beta)

    # f32, fully resident weights: tight check of padding / LN plumbing.
    p_f32 = prepare_ffn_params(w1, b1, w2, b2, gamma, beta,
                               compute_dtype=jnp.float32)
    out_f32 = jax.block_until_ready(positionwise_ffn(x, p_f32))
    assert out_f32.shape == (B, S, E)
    assert jnp.max(jnp.abs(out_f32 - ref)) < 1e-4, "f32 resident path mismatch"

    # f32, forced streamed-F path (num_f > 1): exercises the accumulator branch.
    E2, F2 = 64, 256
    x2i = jax.random.normal(kx, (B, S, E2), dtype=jnp.float32)
    w1b = jax.random.normal(k1, (F2, E2), dtype=jnp.float32) * (1.0 / jnp.sqrt(E2))
    b1b = jax.random.normal(k2, (F2,), dtype=jnp.float32) * 0.01
    w2b = jax.random.normal(k3, (E2, F2), dtype=jnp.float32) * (1.0 / jnp.sqrt(F2))
    b2b = jax.random.normal(k4, (E2,), dtype=jnp.float32) * 0.01
    g2 = jnp.ones((E2,), dtype=jnp.float32)
    be2 = jnp.zeros((E2,), dtype=jnp.float32)
    ref2 = _reference(x2i, w1b, b1b, w2b, b2b, g2, be2)
    p_stream = prepare_ffn_params(w1b, b1b, w2b, b2b, g2, be2,
                                  compute_dtype=jnp.float32, tile_f=128)
    assert p_stream["num_f"] > 1
    out_stream = jax.block_until_ready(positionwise_ffn(x2i, p_stream))
    assert jnp.max(jnp.abs(out_stream - ref2)) < 1e-4, "streamed path mismatch"

    # Default fast path: bf16 matmuls with f32 accumulation.
    p_bf16 = prepare_ffn_params(w1, b1, w2, b2, gamma, beta)
    out_bf16 = jax.block_until_ready(positionwise_ffn(x, p_bf16))
    assert out_bf16.shape == (B, S, E)
    assert jnp.max(jnp.abs(out_bf16 - ref)) < 5e-2, "bf16 path mismatch"

    print("KERNEL_OK")
</pallas_src>

<mosaic_0001>
module attributes {stable_mosaic.version = 11 : i64} {
  func.func @_ffn_kernel(%arg0: i32, %arg1: i32, %arg2: memref<16x256xf32, #tpu.memory_space<vmem>>, %arg3: memref<256x256xf32, #tpu.memory_space<vmem>>, %arg4: memref<1x256xf32, #tpu.memory_space<vmem>>, %arg5: memref<256x256xf32, #tpu.memory_space<vmem>>, %arg6: memref<1x256xf32, #tpu.memory_space<vmem>>, %arg7: memref<1x256xf32, #tpu.memory_space<vmem>>, %arg8: memref<1x256xf32, #tpu.memory_space<vmem>>, %arg9: memref<16x256xf32, #tpu.memory_space<vmem>>) attributes {dimension_semantics = [#tpu.dimension_semantics<parallel>, #tpu.dimension_semantics<arbitrary>], iteration_bounds = array<i64: 1, 1>, scalar_prefetch = 0 : i64, scratch_operands = 0 : i64, tpu.core_type = #tpu.core_type<tc>, window_params = [{transform_indices = @transform_0, window_bounds = array<i64: 16, 256>}, {pipeline_mode = #tpu.pipeline_mode<synchronous>, transform_indices = @transform_1, window_bounds = array<i64: 256, 256>}, {pipeline_mode = #tpu.pipeline_mode<synchronous>, transform_indices = @transform_2, window_bounds = array<i64: 1, 256>}, {pipeline_mode = #tpu.pipeline_mode<synchronous>, transform_indices = @transform_3, window_bounds = array<i64: 256, 256>}, {pipeline_mode = #tpu.pipeline_mode<synchronous>, transform_indices = @transform_4, window_bounds = array<i64: 1, 256>}, {pipeline_mode = #tpu.pipeline_mode<synchronous>, transform_indices = @transform_5, window_bounds = array<i64: 1, 256>}, {pipeline_mode = #tpu.pipeline_mode<synchronous>, transform_indices = @transform_6, window_bounds = array<i64: 1, 256>}, {transform_indices = @transform_7, window_bounds = array<i64: 16, 256>}]} {
    %c0 = arith.constant 0 : index
    %c0_0 = arith.constant 0 : index
    %0 = vector.load %arg2[%c0, %c0_0] : memref<16x256xf32, #tpu.memory_space<vmem>>, vector<16x256xf32>
    %c0_1 = arith.constant 0 : index
    %c0_2 = arith.constant 0 : index
    %1 = vector.load %arg3[%c0_1, %c0_2] : memref<256x256xf32, #tpu.memory_space<vmem>>, vector<256x256xf32>
    %cst = arith.constant dense<0.000000e+00> : vector<16x256xf32>
    %2 = tpu.matmul %0, %1, %cst {dimension_numbers = #tpu.dot_dimension_numbers<[1], [0], [0], [1], [0, 0, 1, 1], [], []>} : vector<16x256xf32>, vector<256x256xf32>, vector<16x256xf32> -> vector<16x256xf32>
    %c0_3 = arith.constant 0 : index
    %c0_4 = arith.constant 0 : index
    %3 = vector.load %arg4[%c0_3, %c0_4] : memref<1x256xf32, #tpu.memory_space<vmem>>, vector<1x256xf32>
    %4 = vector.broadcast %3 : vector<1x256xf32> to vector<16x256xf32>
    %5 = arith.addf %2, %4 : vector<16x256xf32>
    %cst_5 = arith.constant 0.000000e+00 : f32
    %6 = vector.broadcast %cst_5 : f32 to vector<16x256xf32>
    %7 = arith.maximumf %5, %6 : vector<16x256xf32>
    %c0_6 = arith.constant 0 : index
    %c0_7 = arith.constant 0 : index
    %8 = vector.load %arg5[%c0_6, %c0_7] : memref<256x256xf32, #tpu.memory_space<vmem>>, vector<256x256xf32>
    %cst_8 = arith.constant dense<0.000000e+00> : vector<16x256xf32>
    %9 = tpu.matmul %7, %8, %cst_8 {dimension_numbers = #tpu.dot_dimension_numbers<[1], [0], [0], [1], [0, 0, 1, 1], [], []>} : vector<16x256xf32>, vector<256x256xf32>, vector<16x256xf32> -> vector<16x256xf32>
    %c0_9 = arith.constant 0 : index
    %c0_10 = arith.constant 0 : index
    %10 = vector.load %arg6[%c0_9, %c0_10] : memref<1x256xf32, #tpu.memory_space<vmem>>, vector<1x256xf32>
    %11 = vector.broadcast %10 : vector<1x256xf32> to vector<16x256xf32>
    %12 = arith.addf %9, %11 : vector<16x256xf32>
    %c0_11 = arith.constant 0 : index
    %c0_12 = arith.constant 0 : index
    %13 = vector.load %arg2[%c0_11, %c0_12] : memref<16x256xf32, #tpu.memory_space<vmem>>, vector<16x256xf32>
    %14 = arith.addf %12, %13 : vector<16x256xf32>
    %cst_13 = arith.constant dense<0.000000e+00> : vector<16xf32>
    %15 = vector.multi_reduction <add>, %14, %cst_13 [1] : vector<16x256xf32> to vector<16xf32>
    %16 = vector.shape_cast %15 : vector<16xf32> to vector<16x1xf32>
    %cst_14 = arith.constant 3.125000e-02 : f32
    %17 = vector.broadcast %cst_14 : f32 to vector<16x1xf32>
    %18 = arith.mulf %16, %17 : vector<16x1xf32>
    %19 = vector.broadcast %18 : vector<16x1xf32> to vector<16x256xf32>
    %20 = arith.subf %14, %19 : vector<16x256xf32>
    %21 = tpu.iota {dimensions = array<i32: 1>} : vector<16x256xi32>
    %c32_i32 = arith.constant 32 : i32
    %22 = vector.broadcast %c32_i32 : i32 to vector<16x256xi32>
    %23 = arith.cmpi slt, %21, %22 : vector<16x256xi32>
    %cst_15 = arith.constant 0.000000e+00 : f32
    %24 = vector.broadcast %cst_15 : f32 to vector<16x256xf32>
    %25 = arith.select %23, %20, %24 : vector<16x256xi1>, vector<16x256xf32>
    %26 = arith.mulf %25, %25 : vector<16x256xf32>
    %cst_16 = arith.constant dense<0.000000e+00> : vector<16xf32>
    %27 = vector.multi_reduction <add>, %26, %cst_16 [1] : vector<16x256xf32> to vector<16xf32>
    %28 = vector.shape_cast %27 : vector<16xf32> to vector<16x1xf32>
    %cst_17 = arith.constant 3.125000e-02 : f32
    %29 = vector.broadcast %cst_17 : f32 to vector<16x1xf32>
    %30 = arith.mulf %28, %29 : vector<16x1xf32>
    %cst_18 = arith.constant 9.99999974E-6 : f32
    %31 = vector.broadcast %cst_18 : f32 to vector<16x1xf32>
    %32 = arith.addf %30, %31 : vector<16x1xf32>
    %33 = math.rsqrt %32 : vector<16x1xf32>
    %34 = vector.broadcast %33 : vector<16x1xf32> to vector<16x256xf32>
    %35 = arith.mulf %25, %34 : vector<16x256xf32>
    %c0_19 = arith.constant 0 : index
    %c0_20 = arith.constant 0 : index
    %36 = vector.load %arg7[%c0_19, %c0_20] : memref<1x256xf32, #tpu.memory_space<vmem>>, vector<1x256xf32>
    %37 = vector.broadcast %36 : vector<1x256xf32> to vector<16x256xf32>
    %38 = arith.mulf %35, %37 : vector<16x256xf32>
    %c0_21 = arith.constant 0 : index
    %c0_22 = arith.constant 0 : index
    %39 = vector.load %arg8[%c0_21, %c0_22] : memref<1x256xf32, #tpu.memory_space<vmem>>, vector<1x256xf32>
    %40 = vector.broadcast %39 : vector<1x256xf32> to vector<16x256xf32>
    %41 = arith.addf %38, %40 : vector<16x256xf32>
    %c0_23 = arith.constant 0 : index
    %c0_24 = arith.constant 0 : index
    %42 = vector.load %arg9[%c0_23, %c0_24] : memref<16x256xf32, #tpu.memory_space<vmem>>, vector<16x256xf32>
    tpu.vector_store %arg9[%c0_23, %c0_24], %41 {strides = array<i32>} : memref<16x256xf32, #tpu.memory_space<vmem>>, vector<16x256xf32>,
    return
  }
  func.func @transform_0(%arg0: i32, %arg1: i32) -> (i32, i32) {
    %c0_i32 = arith.constant 0 : i32
    %c0_i32_0 = arith.constant 0 : i32
    return %arg0, %c0_i32 : i32, i32
  }
  func.func @transform_1(%arg0: i32, %arg1: i32) -> (i32, i32) {
    %c0_i32 = arith.constant 0 : i32
    %c0_i32_0 = arith.constant 0 : i32
    %c0_i32_1 = arith.constant 0 : i32
    return %c0_i32, %c0_i32_0 : i32, i32
  }
  func.func @transform_2(%arg0: i32, %arg1: i32) -> (i32, i32) {
    %c0_i32 = arith.constant 0 : i32
    %c0_i32_0 = arith.constant 0 : i32
    %c0_i32_1 = arith.constant 0 : i32
    return %c0_i32, %c0_i32_0 : i32, i32
  }
  func.func @transform_3(%arg0: i32, %arg1: i32) -> (i32, i32) {
    %c0_i32 = arith.constant 0 : i32
    %c0_i32_0 = arith.constant 0 : i32
    %c0_i32_1 = arith.constant 0 : i32
    return %c0_i32, %c0_i32_0 : i32, i32
  }
  func.func @transform_4(%arg0: i32, %arg1: i32) -> (i32, i32) {
    %c0_i32 = arith.constant 0 : i32
    %c0_i32_0 = arith.constant 0 : i32
    %c0_i32_1 = arith.constant 0 : i32
    return %c0_i32, %c0_i32_0 : i32, i32
  }
  func.func @transform_5(%arg0: i32, %arg1: i32) -> (i32, i32) {
    %c0_i32 = arith.constant 0 : i32
    %c0_i32_0 = arith.constant 0 : i32
    %c0_i32_1 = arith.constant 0 : i32
    return %c0_i32, %c0_i32_0 : i32, i32
  }
  func.func @transform_6(%arg0: i32, %arg1: i32) -> (i32, i32) {
    %c0_i32 = arith.constant 0 : i32
    %c0_i32_0 = arith.constant 0 : i32
    %c0_i32_1 = arith.constant 0 : i32
    return %c0_i32, %c0_i32_0 : i32, i32
  }
  func.func @transform_7(%arg0: i32, %arg1: i32) -> (i32, i32) {
    %c0_i32 = arith.constant 0 : i32
    %c0_i32_0 = arith.constant 0 : i32
    return %arg0, %c0_i32 : i32, i32
  }
}

</mosaic_0001>

<bundles_post_ra>
// kernel: tpu_custom_call.1
= control target key start
LH: loop header
LB: loop body
LE: loop exit
PB: predicated region body
PF: predicated region fallthrough
CT: control target
= control target key end

     0   :  { %12 = vsyncpa [#allocation3], 0  ;;  %s687_s0 = inlined_call_operand.hbm [shape: f32[16,256], index: 0, kind: input, shape index: {}]   ;;  %s688_s1 = inlined_call_operand.hbm [shape: f32[256,256], index: 1, kind: input, shape index: {}]   ;;  %s689_s2 = inlined_call_operand.vmem [shape: f32[1,256], index: 2, kind: input, shape index: {}]   ;;  %s690_s3 = inlined_call_operand.hbm [shape: f32[256,256], index: 3, kind: input, shape index: {}]   ;;  %s691_s4 = inlined_call_operand.vmem [shape: f32[1,256], index: 4, kind: input, shape index: {}]   ;;  %s692_s5 = inlined_call_operand.vmem [shape: f32[1,256], index: 5, kind: input, shape index: {}]   ;;  %s693_s6 = inlined_call_operand.vmem [shape: f32[1,256], index: 6, kind: input, shape index: {}]   ;;  %s694_s7 = inlined_call_operand.hbm [shape: f32[16,256], index: 7, kind: output, shape index: {}]  }
   0x1   :  { %13 = vsyncpa [#allocation6], 0 }
   0x2   :  { %14 = vsyncpa [#allocation4], 0  ;;  %s577_s24 = smov [#allocation5]   ;;  %s578_s26 = smov [#allocation2]  }
   0x3   :  { %s32_s25 = sshll.u32 %s577_s24, 4  ;;  %s20_s27 = sshll.u32 %s578_s26, 4  ;;  %s33_s25 = int_to_ptr.vmem [resolvable:$true] %s32_s25  ;;  %s21_s27 = int_to_ptr.vmem [resolvable:$true] %s20_s27 }
   0x4   :  { %s499_s28 = scalar_lea.vmem %s33_s25, 8192  ;;  %p504_p1 = scmp.lt.s32.totalorder %s33_s25, %s33_s25 }
   0x5   :  { %p500_p0 = scmp.ne.s32.totalorder %s33_s25, %s499_s28  ;;  %p505_p2 = scmp.lt.s32.totalorder %s499_s28, %s499_s28 }
   0x7   :  { %p506_p3 = por %p505_p2, %p504_p1 }
   0x9   :  { %p507_p4 = pnand %p506_p3, %p500_p0 }
   0xb   :  { %510 = shalt.err (!%p507_p4)
}
   0xc   :  { %s579_s29 = smov 256   ;;  %s580_s30 = smov 16  }
   0xd   :  { %38 = dma.hbm_to_vmem [thread:$0]  %s688_s1, 8192, %s33_s25, [#allocation6], %s579_s29, %s579_s29, %s580_s30  }
   0xe   :  { %s519_s10 = scalar_lea.vmem %s21_s27, 512  ;;  %p524_p6 = scmp.lt.s32.totalorder %s21_s27, %s21_s27 }
   0xf   :  { %p520_p5 = scmp.ne.s32.totalorder %s21_s27, %s519_s10  ;;  %p525_p7 = scmp.lt.s32.totalorder %s519_s10, %s519_s10 }
  0x11   :  { %p526_p8 = por %p525_p7, %p524_p6 }
  0x13   :  { %p527_p9 = pnand %p526_p8, %p520_p5 }
  0x15   :  { %530 = shalt.err (!%p527_p9)
}
  0x16   :  { %26 = dma.hbm_to_vmem [thread:$0]  %s687_s0, 512, %s21_s27, [#allocation3], %s579_s29, %s579_s29, %s580_s30  }
  0x17   :  { %s581_s13 = smov [#allocation7]  }
  0x18   :  { %s46_s14 = sshll.u32 %s581_s13, 4  ;;  %s47_s14 = int_to_ptr.vmem [resolvable:$true] %s46_s14 }
  0x19   :  { %s539_s15 = scalar_lea.vmem %s47_s14, 8192  ;;  %p544_p11 = scmp.lt.s32.totalorder %s47_s14, %s47_s14 }
  0x1a   :  { %p540_p10 = scmp.ne.s32.totalorder %s47_s14, %s539_s15  ;;  %p545_p12 = scmp.lt.s32.totalorder %s539_s15, %s539_s15 }
  0x1c   :  { %p546_p13 = por %p545_p12, %p544_p11 }
  0x1e   :  { %p547_p0 = pnand %p546_p13, %p540_p10 }
  0x20   :  { %550 = shalt.err (!%p547_p0)
}
  0x21   :  { %52 = dma.hbm_to_vmem [thread:$0]  %s690_s3, 8192, %s47_s14, [#allocation6], %s579_s29, %s579_s29, %s580_s30  }
  0x22   :  { %571 = dma.done.wait [#allocation3], 512  }
  0x23   :  { %572 = vsyncadd [#allocation3], 4294966784 }
  0x24   :  { %573 = dma.done.wait [#allocation6], 16384  }
  0x25   :  { %574 = vsyncadd [#allocation6], 4294950912  ;;  %v103_v0 = vld [vmem:[#allocation5 + $0xf8] sm:$0xff]  ;;  %v102_v1 = vld [vmem:[#allocation5 + $0xf0] sm:$0xff] }
  0x26   :  { %v101_v2 = vld [vmem:[#allocation5 + $0xe8] sm:$0xff]  ;;  %148 = vmatprep.subr.mxu0 %v103_v0  ;;  %v100_v3 = vld [vmem:[#allocation5 + $0xe0] sm:$0xff]  ;;  %v99_v4 = vld [vmem:[#allocation5 + $0xd8] sm:$0xff] }
  0x27   :  { %149 = vmatpush1.msra.mxu0 %v102_v1  ;;  %v98_v5 = vld [vmem:[#allocation5 + $0xd0] sm:$0xff]  ;;  %v97_v6 = vld [vmem:[#allocation5 + $0xc8] sm:$0xff]  ;;  %v96_v7 = vld [vmem:[#allocation5 + $0xc0] sm:$0xff] }
  0x28   :  { %150 = vmatprep.subr.mxu0 %v101_v2  ;;  %v95_v8 = vld [vmem:[#allocation5 + $0xb8] sm:$0xff]  ;;  %v94_v9 = vld [vmem:[#allocation5 + $0xb0] sm:$0xff]  ;;  %v93_v10 = vld [vmem:[#allocation5 + $0xa8] sm:$0xff] }
  0x29   :  { %151 = vmatpush1.msra.mxu0 %v100_v3  ;;  %v92_v11 = vld [vmem:[#allocation5 + $0xa0] sm:$0xff]  ;;  %v91_v12 = vld [vmem:[#allocation5 + $0x98] sm:$0xff]  ;;  %v90_v13 = vld [vmem:[#allocation5 + $0x90] sm:$0xff] }
  0x2a   :  { %152 = vmatprep.subr.mxu0 %v99_v4  ;;  %v89_v14 = vld [vmem:[#allocation5 + $0x88] sm:$0xff]  ;;  %v88_v15 = vld [vmem:[#allocation5 + $0x80] sm:$0xff]  ;;  %v87_v16 = vld [vmem:[#allocation5 + $0x78] sm:$0xff] }
  0x2b   :  { %153 = vmatpush1.msra.mxu0 %v98_v5  ;;  %v86_v17 = vld [vmem:[#allocation5 + $0x70] sm:$0xff]  ;;  %v85_v18 = vld [vmem:[#allocation5 + $0x68] sm:$0xff]  ;;  %v84_v19 = vld [vmem:[#allocation5 + $0x60] sm:$0xff] }
  0x2c   :  { %154 = vmatprep.subr.mxu0 %v97_v6  ;;  %v83_v20 = vld [vmem:[#allocation5 + $0x58] sm:$0xff]  ;;  %v82_v21 = vld [vmem:[#allocation5 + $0x50] sm:$0xff]  ;;  %v81_v22 = vld [vmem:[#allocation5 + $0x48] sm:$0xff] }
  0x2d   :  { %155 = vmatpush1.msra.mxu0 %v96_v7  ;;  %v80_v23 = vld [vmem:[#allocation5 + $0x40] sm:$0xff]  ;;  %v641_v24 = vld [vmem:[#allocation2 + $0x8] sm:$0xff]  ;;  %v79_v25 = vld [vmem:[#allocation5 + $0x38] sm:$0xff] }
  0x2e   :  { %156 = vmatprep.subr.mxu0 %v95_v8  ;;  %v78_v26 = vld [vmem:[#allocation5 + $0x30] sm:$0xff]  ;;  %212 = vmatprep.mubr.f32.mxu0 %v641_v24  ;;  %v260_v27 = vld [vmem:[#allocation7 + $0xf8] sm:$0xff]  ;;  %v258_v29 = vld [vmem:[#allocation7 + $0xe8] sm:$0xff] }
  0x2f   :  { %157 = vmatpush1.msra.mxu0 %v94_v9  ;;  %305 = vmatprep.subr.mxu1 %v260_v27  ;;  %v259_v28 = vld [vmem:[#allocation7 + $0xf0] sm:$0xff]  ;;  %v257_v30 = vld [vmem:[#allocation7 + $0xe0] sm:$0xff]  ;;  %v77_v31 = vld [vmem:[#allocation5 + $0x28] sm:$0xff] }
  0x30   :  { %158 = vmatprep.subr.mxu0 %v93_v10  ;;  %306 = vmatpush1.msra.mxu1 %v259_v28  ;;  %v256_v32 = vld [vmem:[#allocation7 + $0xd8] sm:$0xff]  ;;  %v76_v33 = vld [vmem:[#allocation5 + $0x20] sm:$0xff]  ;;  %v255_v34 = vld [vmem:[#allocation7 + $0xd0] sm:$0xff] }
  0x31   :  { %159 = vmatpush1.msra.mxu0 %v92_v11  ;;  %307 = vmatprep.subr.mxu1 %v258_v29  ;;  %v75_v35 = vld [vmem:[#allocation5 + $0x18] sm:$0xff]  ;;  %v254_v36 = vld [vmem:[#allocation7 + $0xc8] sm:$0xff]  ;;  %v74_v37 = vld [vmem:[#allocation5 + $0x10] sm:$0xff] }
  0x32   :  { %160 = vmatprep.subr.mxu0 %v91_v12  ;;  %308 = vmatpush1.msra.mxu1 %v257_v30  ;;  %v253_v38 = vld [vmem:[#allocation7 + $0xc0] sm:$0xff]  ;;  %v73_v39 = vld [vmem:[#allocation5 + $0x8] sm:$0xff]  ;;  %v252_v40 = vld [vmem:[#allocation7 + $0xb8] sm:$0xff] }
  0x33   :  { %161 = vmatpush1.msra.mxu0 %v90_v13  ;;  %309 = vmatprep.subr.mxu1 %v256_v32  ;;  %v72_v41 = vld [vmem:[#allocation5] sm:$0xff]  ;;  %v251_v42 = vld [vmem:[#allocation7 + $0xb0] sm:$0xff]  ;;  %v135_v43 = vld [vmem:[#allocation5 + $0x1f8] sm:$0xff] }
  0x34   :  { %162 = vmatprep.subr.mxu0 %v89_v14  ;;  %310 = vmatpush1.msra.mxu1 %v255_v34  ;;  %v250_v44 = vld [vmem:[#allocation7 + $0xa8] sm:$0xff]  ;;  %v134_v45 = vld [vmem:[#allocation5 + $0x1f0] sm:$0xff]  ;;  %v249_v46 = vld [vmem:[#allocation7 + $0xa0] sm:$0xff] }
  0x35   :  { %163 = vmatpush1.msra.mxu0 %v88_v15  ;;  %311 = vmatprep.subr.mxu1 %v254_v36  ;;  %v133_v47 = vld [vmem:[#allocation5 + $0x1e8] sm:$0xff]  ;;  %v248_v48 = vld [vmem:[#allocation7 + $0x98] sm:$0xff]  ;;  %v132_v49 = vld [vmem:[#allocation5 + $0x1e0] sm:$0xff] }
  0x36   :  { %164 = vmatprep.subr.mxu0 %v87_v16  ;;  %312 = vmatpush1.msra.mxu1 %v253_v38  ;;  %v247_v50 = vld [vmem:[#allocation7 + $0x90] sm:$0xff]  ;;  %v131_v51 = vld [vmem:[#allocation5 + $0x1d8] sm:$0xff]  ;;  %v246_v52 = vld [vmem:[#allocation7 + $0x88] sm:$0xff] }
  0x37   :  { %165 = vmatpush1.msra.mxu0 %v86_v17  ;;  %313 = vmatprep.subr.mxu1 %v252_v40  ;;  %v130_v53 = vld [vmem:[#allocation5 + $0x1d0] sm:$0xff]  ;;  %v245_v54 = vld [vmem:[#allocation7 + $0x80] sm:$0xff]  ;;  %v129_v55 = vld [vmem:[#allocation5 + $0x1c8] sm:$0xff] }
  0x38   :  { %166 = vmatprep.subr.mxu0 %v85_v18  ;;  %314 = vmatpush1.msra.mxu1 %v251_v42  ;;  %v244_v56 = vld [vmem:[#allocation7 + $0x78] sm:$0xff]  ;;  %v128_v57 = vld [vmem:[#allocation5 + $0x1c0] sm:$0xff]  ;;  %v243_v58 = vld [vmem:[#allocation7 + $0x70] sm:$0xff] }
  0x39   :  { %167 = vmatpush1.msra.mxu0 %v84_v19  ;;  %315 = vmatprep.subr.mxu1 %v250_v44  ;;  %v127_v59 = vld [vmem:[#allocation5 + $0x1b8] sm:$0xff]  ;;  %v242_v60 = vld [vmem:[#allocation7 + $0x68] sm:$0xff]  ;;  %v126_v61 = vld [vmem:[#allocation5 + $0x1b0] sm:$0xff] }
  0x3a   :  { %168 = vmatprep.subr.mxu0 %v83_v20  ;;  %316 = vmatpush1.msra.mxu1 %v249_v46  ;;  %v241_v62 = vld [vmem:[#allocation7 + $0x60] sm:$0xff]  ;;  %v125_v63 = vld [vmem:[#allocation5 + $0x1a8] sm:$0xff]  ;;  %v240_v0 = vld [vmem:[#allocation7 + $0x58] sm:$0xff] }
  0x3b   :  { %169 = vmatpush1.msra.mxu0 %v82_v21  ;;  %317 = vmatprep.subr.mxu1 %v248_v48  ;;  %v124_v1 = vld [vmem:[#allocation5 + $0x1a0] sm:$0xff]  ;;  %v239_v2 = vld [vmem:[#allocation7 + $0x50] sm:$0xff]  ;;  %v123_v3 = vld [vmem:[#allocation5 + $0x198] sm:$0xff] }
  0x3c   :  { %170 = vmatprep.subr.mxu0 %v81_v22  ;;  %318 = vmatpush1.msra.mxu1 %v247_v50  ;;  %v238_v4 = vld [vmem:[#allocation7 + $0x48] sm:$0xff]  ;;  %v122_v5 = vld [vmem:[#allocation5 + $0x190] sm:$0xff]  ;;  %v237_v6 = vld [vmem:[#allocation7 + $0x40] sm:$0xff] }
  0x3d   :  { %171 = vmatpush1.msra.mxu0 %v80_v23  ;;  %319 = vmatprep.subr.mxu1 %v246_v52  ;;  %v121_v7 = vld [vmem:[#allocation5 + $0x188] sm:$0xff]  ;;  %v236_v8 = vld [vmem:[#allocation7 + $0x38] sm:$0xff]  ;;  %v120_v9 = vld [vmem:[#allocation5 + $0x180] sm:$0xff] }
  0x3e   :  { %172 = vmatprep.subr.mxu0 %v79_v25  ;;  %320 = vmatpush1.msra.mxu1 %v245_v54  ;;  %v235_v10 = vld [vmem:[#allocation7 + $0x30] sm:$0xff]  ;;  %v119_v11 = vld [vmem:[#allocation5 + $0x178] sm:$0xff]  ;;  %v234_v12 = vld [vmem:[#allocation7 + $0x28] sm:$0xff] }
  0x3f   :  { %173 = vmatpush1.msra.mxu0 %v78_v26  ;;  %321 = vmatprep.subr.mxu1 %v244_v56  ;;  %v118_v13 = vld [vmem:[#allocation5 + $0x170] sm:$0xff]  ;;  %v233_v14 = vld [vmem:[#allocation7 + $0x20] sm:$0xff]  ;;  %v117_v15 = vld [vmem:[#allocation5 + $0x168] sm:$0xff] }
  0x40   :  { %174 = vmatprep.subr.mxu0 %v77_v31  ;;  %322 = vmatpush1.msra.mxu1 %v243_v58  ;;  %v232_v16 = vld [vmem:[#allocation7 + $0x18] sm:$0xff]  ;;  %v116_v17 = vld [vmem:[#allocation5 + $0x160] sm:$0xff]  ;;  %v231_v18 = vld [vmem:[#allocation7 + $0x10] sm:$0xff] }
  0x41   :  { %175 = vmatpush1.msra.mxu0 %v76_v33  ;;  %323 = vmatprep.subr.mxu1 %v242_v60  ;;  %v115_v19 = vld [vmem:[#allocation5 + $0x158] sm:$0xff]  ;;  %v230_v20 = vld [vmem:[#allocation7 + $0x8] sm:$0xff]  ;;  %v114_v21 = vld [vmem:[#allocation5 + $0x150] sm:$0xff] }
  0x42   :  { %176 = vmatprep.subr.mxu0 %v75_v35  ;;  %324 = vmatpush1.msra.mxu1 %v241_v62  ;;  %v229_v22 = vld [vmem:[#allocation7] sm:$0xff]  ;;  %v113_v23 = vld [vmem:[#allocation5 + $0x148] sm:$0xff]  ;;  %v292_v25 = vld [vmem:[#allocation7 + $0x1f8] sm:$0xff] }
  0x43   :  { %177 = vmatpush1.msra.mxu0 %v74_v37  ;;  %325 = vmatprep.subr.mxu1 %v240_v0  ;;  %v112_v26 = vld [vmem:[#allocation5 + $0x140] sm:$0xff]  ;;  %v291_v27 = vld [vmem:[#allocation7 + $0x1f0] sm:$0xff]  ;;  %v111_v28 = vld [vmem:[#allocation5 + $0x138] sm:$0xff] }
  0x44   :  { %178 = vmatprep.subr.mxu0 %v73_v39  ;;  %326 = vmatpush1.msra.mxu1 %v239_v2  ;;  %v290_v29 = vld [vmem:[#allocation7 + $0x1e8] sm:$0xff]  ;;  %v110_v30 = vld [vmem:[#allocation5 + $0x130] sm:$0xff]  ;;  %v289_v31 = vld [vmem:[#allocation7 + $0x1e0] sm:$0xff] }
  0x45   :  { %179 = vmatpush1.msra.mxu0 %v72_v41  ;;  %327 = vmatprep.subr.mxu1 %v238_v4  ;;  %v109_v32 = vld [vmem:[#allocation5 + $0x128] sm:$0xff]  ;;  %v288_v33 = vld [vmem:[#allocation7 + $0x1d8] sm:$0xff]  ;;  %v108_v34 = vld [vmem:[#allocation5 + $0x120] sm:$0xff] }
  0x46   :  { %180 = vmatprep.subr.mxu0 %v135_v43  ;;  %328 = vmatpush1.msra.mxu1 %v237_v6  ;;  %v287_v35 = vld [vmem:[#allocation7 + $0x1d0] sm:$0xff]  ;;  %v107_v36 = vld [vmem:[#allocation5 + $0x118] sm:$0xff]  ;;  %v286_v37 = vld [vmem:[#allocation7 + $0x1c8] sm:$0xff] }
  0x47   :  { %181 = vmatpush2.msra.mxu0 %v134_v45  ;;  %329 = vmatprep.subr.mxu1 %v236_v8  ;;  %v106_v38 = vld [vmem:[#allocation5 + $0x110] sm:$0xff]  ;;  %v285_v39 = vld [vmem:[#allocation7 + $0x1c0] sm:$0xff]  ;;  %v105_v40 = vld [vmem:[#allocation5 + $0x108] sm:$0xff] }
  0x48   :  { %182 = vmatprep.subr.mxu0 %v133_v47  ;;  %330 = vmatpush1.msra.mxu1 %v235_v10  ;;  %v284_v41 = vld [vmem:[#allocation7 + $0x1b8] sm:$0xff]  ;;  %v104_v42 = vld [vmem:[#allocation5 + $0x100] sm:$0xff]  ;;  %v283_v43 = vld [vmem:[#allocation7 + $0x1b0] sm:$0xff] }
  0x49   :  { %183 = vmatpush2.msra.mxu0 %v132_v49  ;;  %331 = vmatprep.subr.mxu1 %v234_v12  ;;  %v644_v44 = vld [vmem:[#allocation2] sm:$0xff]  ;;  %v282_v45 = vld [vmem:[#allocation7 + $0x1a8] sm:$0xff]  ;;  %v646_v46 = vld [vmem:[#allocation2 + $0x18] sm:$0xff] }
  0x4a   :  { %184 = vmatprep.subr.mxu0 %v131_v51  ;;  %332 = vmatpush1.msra.mxu1 %v233_v14  ;;  %v281_v47 = vld [vmem:[#allocation7 + $0x1a0] sm:$0xff]  ;;  %v280_v48 = vld [vmem:[#allocation7 + $0x198] sm:$0xff]  ;;  %v279_v49 = vld [vmem:[#allocation7 + $0x190] sm:$0xff] }
  0x4b   :  { %185 = vmatpush2.msra.mxu0 %v130_v53  ;;  %333 = vmatprep.subr.mxu1 %v232_v16  ;;  %v650_v50 = vld [vmem:[#allocation2 + $0x10] sm:$0xff]  ;;  %v278_v51 = vld [vmem:[#allocation7 + $0x188] sm:$0xff]  ;;  %v277_v52 = vld [vmem:[#allocation7 + $0x180] sm:$0xff] }
  0x4c   :  { %186 = vmatprep.subr.mxu0 %v129_v55  ;;  %334 = vmatpush1.msra.mxu1 %v231_v18  ;;  %v276_v53 = vld [vmem:[#allocation7 + $0x178] sm:$0xff]  ;;  %v275_v54 = vld [vmem:[#allocation7 + $0x170] sm:$0xff]  ;;  %v274_v55 = vld [vmem:[#allocation7 + $0x168] sm:$0xff] }
  0x4d   :  { %187 = vmatpush2.msra.mxu0 %v128_v57  ;;  %335 = vmatprep.subr.mxu1 %v230_v20  ;;  %v273_v56 = vld [vmem:[#allocation7 + $0x160] sm:$0xff]  ;;  %v272_v57 = vld [vmem:[#allocation7 + $0x158] sm:$0xff]  ;;  %v271_v58 = vld [vmem:[#allocation7 + $0x150] sm:$0xff] }
  0x4e   :  { %188 = vmatprep.subr.mxu0 %v127_v59  ;;  %336 = vmatpush1.msra.mxu1 %v229_v22  ;;  %v270_v59 = vld [vmem:[#allocation7 + $0x148] sm:$0xff]  ;;  %v269_v60 = vld [vmem:[#allocation7 + $0x140] sm:$0xff]  ;;  %v267_v62 = vld [vmem:[#allocation7 + $0x130] sm:$0xff] }
  0x4f   :  { %189 = vmatpush2.msra.mxu0 %v126_v61  ;;  %337 = vmatprep.subr.mxu1 %v292_v25  ;;  %v268_v61 = vld [vmem:[#allocation7 + $0x138] sm:$0xff]  ;;  %v265_v0 = vld [vmem:[#allocation7 + $0x120] sm:$0xff]  ;;  %v263_v2 = vld [vmem:[#allocation7 + $0x110] sm:$0xff] }
  0x50   :  { %190 = vmatprep.subr.mxu0 %v125_v63  ;;  %338 = vmatpush2.msra.mxu1 %v291_v27  ;;  %v266_v63 = vld [vmem:[#allocation7 + $0x128] sm:$0xff]  ;;  %v261_v4 = vld [vmem:[#allocation7 + $0x100] sm:$0xff] }
  0x51   :  { %191 = vmatpush2.msra.mxu0 %v124_v1  ;;  %339 = vmatprep.subr.mxu1 %v290_v29  ;;  %v264_v1 = vld [vmem:[#allocation7 + $0x118] sm:$0xff]  ;;  %v136_v8 = vld [vmem:[%s689_s2] sm:$0x3] }
  0x52   :  { %192 = vmatprep.subr.mxu0 %v123_v3  ;;  %340 = vmatpush2.msra.mxu1 %v289_v31  ;;  %v262_v3 = vld [vmem:[#allocation7 + $0x108] sm:$0xff]  ;;  %v293_v25 = vld [vmem:[%s691_s4] sm:$0x3] }
  0x53   :  { %193 = vmatpush2.msra.mxu0 %v122_v5  ;;  %341 = vmatprep.subr.mxu1 %v288_v33  ;;  %v138_v5 = vlaneseq }
  0x54   :  { %194 = vmatprep.subr.mxu0 %v121_v7  ;;  %342 = vmatpush2.msra.mxu1 %v287_v35 }
  0x55   :  { %195 = vmatpush2.msra.mxu0 %v120_v9  ;;  %343 = vmatprep.subr.mxu1 %v286_v37  ;;  %v139_v6 = vshrl.u32 %v138_v5, 7 }
  0x56   :  { %196 = vmatprep.subr.mxu0 %v119_v11  ;;  %344 = vmatpush2.msra.mxu1 %v285_v39 }
  0x57   :  { %197 = vmatpush2.msra.mxu0 %v118_v13  ;;  %345 = vmatprep.subr.mxu1 %v284_v41  ;;  %v653_v7 = vsub.s32 0, %v139_v6  ;;  %v658_v9 = vsub.s32 1, %v139_v6 }
  0x58   :  { %198 = vmatprep.subr.mxu0 %v117_v15  ;;  %346 = vmatpush2.msra.mxu1 %v283_v43 }
  0x59   :  { %199 = vmatpush2.msra.mxu0 %v116_v17  ;;  %347 = vmatprep.subr.mxu1 %v282_v45  ;;  %v141_v10 = vrot.slane %v136_v8, %v653_v7  ;;  %v145_v11 = vrot.slane %v136_v8, %v658_v9  ;;  %v302_v27 = vrot.slane %v293_v25, %v658_v9 }
  0x5a   :  { %200 = vmatprep.subr.mxu0 %v115_v19  ;;  %348 = vmatpush2.msra.mxu1 %v281_v47 }
  0x5b   :  { %201 = vmatpush2.msra.mxu0 %v114_v21  ;;  %349 = vmatprep.subr.mxu1 %v280_v48 }
  0x5c   :  { %202 = vmatprep.subr.mxu0 %v113_v23  ;;  %350 = vmatpush2.msra.mxu1 %v279_v49 }
  0x5d   :  { %203 = vmatpush2.msra.mxu0 %v112_v26  ;;  %351 = vmatprep.subr.mxu1 %v278_v51  ;;  %v298_v26 = vrot.slane %v293_v25, %v653_v7 }
  0x5e   :  { %204 = vmatprep.subr.mxu0 %v111_v28  ;;  %352 = vmatpush2.msra.mxu1 %v277_v52 }
  0x5f   :  { %205 = vmatpush2.msra.mxu0 %v110_v30  ;;  %353 = vmatprep.subr.mxu1 %v276_v53 }
  0x60   :  { %206 = vmatprep.subr.mxu0 %v109_v32  ;;  %354 = vmatpush2.msra.mxu1 %v275_v54 }
  0x61   :  { %207 = vmatpush2.msra.mxu0 %v108_v34  ;;  %355 = vmatprep.subr.mxu1 %v274_v55 }
  0x62   :  { %208 = vmatprep.subr.mxu0 %v107_v36  ;;  %356 = vmatpush2.msra.mxu1 %v273_v56 }
  0x63   :  { %209 = vmatpush2.msra.mxu0 %v106_v38  ;;  %357 = vmatprep.subr.mxu1 %v272_v57 }
  0x64   :  { %210 = vmatprep.subr.mxu0 %v105_v40  ;;  %358 = vmatpush2.msra.mxu1 %v271_v58  ;;  %v427_v58 = vld [vmem:[%s692_s5] sm:$0x3]  ;;  %s582_s5 = smov [#allocation8]  }
  0x65   :  { %211 = vmatpush2.msra.mxu0 %v104_v42  ;;  %359 = vmatprep.subr.mxu1 %v270_v59  ;;  %v399_v42 = vand.u32 127, %v138_v5  ;;  %v443_v59 = vld [vmem:[%s693_s6] sm:$0x3]  ;;  %s468_s6 = sshll.u32 %s582_s5, 4  ;;  %s469_s6 = int_to_ptr.vmem [resolvable:$true] %s468_s6 }
  0x66   :  { %213 = vmatmul.mubr.f32.vlgmr.msra.gmra.mxu0 %v644_v44  ;;  %360 = vmatpush2.msra.mxu1 %v269_v60  ;;  %v432_v60 = vrot.slane %v427_v58, %v653_v7  ;;  %s551_s21 = scalar_lea.vmem %s469_s6, 512  ;;  %p556_p2 = scmp.lt.s32.totalorder %s469_s6, %s469_s6 }
  0x67   :  { %218 = vmatprep.mubr.f32.mxu0 %v646_v46  ;;  %361 = vmatprep.subr.mxu1 %v268_v61  ;;  %vm401_vm0 = vcmp.lt.s32.totalorder %v399_v42, 32  ;;  %v436_v61 = vrot.slane %v427_v58, %v658_v9  ;;  %p552_p1 = scmp.ne.s32.totalorder %s469_s6, %s551_s21  ;;  %p557_p3 = scmp.lt.s32.totalorder %s551_s21, %s551_s21 }
  0x68   :  { %362 = vmatpush2.msra.mxu1 %v267_v62 }
  0x69   :  { %363 = vmatprep.subr.mxu1 %v266_v63  ;;  %p558_p4 = por %p557_p3, %p556_p2 }
  0x6a   :  { %219 = vmatmul.mubr.f32.gmra.mxu0 %v650_v50  ;;  %364 = vmatpush2.msra.mxu1 %v265_v0 }
  0x6b   :  { %365 = vmatprep.subr.mxu1 %v264_v1  ;;  %v448_v1 = vrot.slane %v443_v59, %v653_v7  ;;  %p559_p5 = pnand %p558_p4, %p552_p1 }
  0x6c   :  { %366 = vmatpush2.msra.mxu1 %v263_v2  ;;  %v452_v2 = vrot.slane %v443_v59, %v658_v9 }
  0x6d   :  { %367 = vmatprep.subr.mxu1 %v262_v3 }
  0x6e   :  { %368 = vmatpush2.msra.mxu1 %v261_v4 }
 0x126   :  { %v214_v12 = vpop.f32.mrf.mxu0 }
 0x127   :  { %v215_v13 = vadd.f32 %v214_v12, %v141_v10 }
 0x128   :  { %v216_v14 = vpop.f32.mrf.mxu0 }
 0x129   :  { %v217_v15 = vadd.f32 %v216_v14, %v145_v11  ;;  %v225_v18 = vmax.f32 %v215_v13, 0.0 }
 0x12a   :  { %v220_v16 = vpop.f32.mrf.mxu0 }
 0x12b   :  { %v226_v17 = vmax.f32 %v217_v15, 0.0  ;;  %v221_v19 = vadd.f32 %v220_v16, %v141_v10 }
 0x12c   :  { %v222_v20 = vpop.f32.mrf.mxu0 }
 0x12d   :  { %v223_v21 = vadd.f32 %v222_v20, %v145_v11  ;;  %369 = vmatprep.mubr.f32.mxu1 %v226_v17  ;;  %v227_v23 = vmax.f32 %v221_v19, 0.0 }
 0x12e   :  { %370 = vmatmul.mubr.f32.vlgmr.msra.gmra.mxu1 %v225_v18 }
 0x12f   :  { %v228_v22 = vmax.f32 %v223_v21, 0.0 }
 0x131   :  { %375 = vmatprep.mubr.f32.mxu1 %v228_v22 }
 0x132   :  { %376 = vmatmul.mubr.f32.gmra.mxu1 %v227_v23 }
 0x1ee   :  { %v371_v28 = vpop.f32.mrf.mxu1 }
 0x1ef   :  { %v372_v29 = vadd.f32 %v371_v28, %v298_v26 }
 0x1f0   :  { %v373_v30 = vpop.f32.mrf.mxu1 }
 0x1f1   :  { %v374_v31 = vadd.f32 %v373_v30, %v302_v27  ;;  %v382_v34 = vadd.f32 %v372_v29, %v644_v44 }
 0x1f2   :  { %v377_v32 = vpop.f32.mrf.mxu1 }
 0x1f3   :  { %v378_v33 = vadd.f32 %v377_v32, %v298_v26  ;;  %v383_v35 = vadd.f32 %v374_v31, %v641_v24 }
 0x1f4   :  { %v379_v36 = vpop.f32.mrf.mxu1 }
 0x1f5   :  { %v380_v37 = vadd.f32 %v379_v36, %v302_v27  ;;  %v386_v38 = vadd.f32 %v383_v35, %v382_v34  ;;  %v384_v39 = vadd.f32 %v378_v33, %v650_v50 }
 0x1f7   :  { %v385_v40 = vadd.f32 %v380_v37, %v646_v46  ;;  %387 = vadd.xlane.f32.xlu0 %v386_v38 }
 0x1f9   :  { %v389_v41 = vadd.f32 %v385_v40, %v384_v39 }
 0x1fb   :  { %390 = vadd.xlane.f32.xlu0 %v389_v41 }
 0x280   :  { %v388_v43 = vpop.xlane.xlu0 %387 }
 0x281   :  { %v392_v45 = vmul.f32 0.03125, %v388_v43 }
 0x283   :  { %v394_v47 = vsub.f32 %v382_v34, %v392_v45 }
 0x284   :  { %v391_v48 = vpop.xlane.xlu0 %390 }
 0x285   :  { %v393_v49 = vmul.f32 0.03125, %v391_v48  ;;  %v403_v44 = vsel %vm401_vm0, %v394_v47, 0.0 }
 0x286   :  { %v407_v51 = vmul.f32 %v403_v44, %v403_v44 }
 0x287   :  { %v396_v24 = vsub.f32 %v384_v39, %v393_v49 }
 0x288   :  { %412 = vadd.xlane.f32.xlu1 %v407_v51 }
 0x289   :  { %v405_v52 = vsel %vm401_vm0, %v396_v24, 0.0 }
 0x28a   :  { %v409_v53 = vmul.f32 %v405_v52, %v405_v52 }
 0x28c   :  { %415 = vadd.xlane.f32.xlu1 %v409_v53 }
 0x311   :  { %v413_v50 = vpop.xlane.xlu1 %412 }
 0x312   :  { %v417_v54 = vmul.f32 0.03125, %v413_v50 }
 0x314   :  { %v419_v46 = vadd.f32 1e-05, %v417_v54 }
 0x315   :  { %v416_v55 = vpop.xlane.xlu1 %415 }
 0x316   :  { %487 = vrsqrt.f32 %v419_v46  ;;  %v418_v56 = vmul.f32 0.03125, %v416_v55 }
 0x318   :  { %v420_v57 = vadd.f32 1e-05, %v418_v56 }
 0x31a   :  { %489 = vrsqrt.f32 %v420_v57 }
 0x323   :  { %v488_v62 = vpop.eup %487 }
 0x324   :  { %v423_v63 = vmul.f32 %v488_v62, %v403_v44  ;;  %v424_v0 = vmul.f32 0.0, %v488_v62 }
 0x326   :  { %v439_v3 = vmul.f32 %v432_v60, %v423_v63  ;;  %v440_v4 = vmul.f32 %v436_v61, %v424_v0 }
 0x327   :  { %v490_v5 = vpop.eup %489 }
 0x328   :  { %v425_v6 = vmul.f32 %v490_v5, %v405_v52  ;;  %v426_v8 = vmul.f32 0.0, %v490_v5  ;;  %v455_v10 = vadd.f32 %v448_v1, %v439_v3  ;;  %v456_v11 = vadd.f32 %v452_v2, %v440_v4 }
 0x32a   :  { %v441_v12 = vmul.f32 %v432_v60, %v425_v6  ;;  %v442_v13 = vmul.f32 %v436_v61, %v426_v8  ;;  %459 = vst [vmem:[#allocation8] sm:$0xff] %v455_v10  ;;  %460 = vst [vmem:[#allocation8 + $0x8] sm:$0xff] %v456_v11 }
 0x32c   :  { %v457_v14 = vadd.f32 %v448_v1, %v441_v12  ;;  %v458_v15 = vadd.f32 %v452_v2, %v442_v13 }
 0x32e   :  { %461 = vst [vmem:[#allocation8 + $0x10] sm:$0xff] %v457_v14  ;;  %462 = vst [vmem:[#allocation8 + $0x18] sm:$0xff] %v458_v15 }
 0x32f   :  { %562 = shalt.err (!%p559_p5)
}
 0x330   :  { %474 = dma.vmem_to_hbm [thread:$0]  %s469_s6, 512, %s694_s7, [#allocation4], %s579_s29, %s579_s29, %s580_s30  }
 0x331   :  { %575 = dma.done.wait [#allocation4], 512  }
 0x332   :  { %576 = vsyncadd [#allocation4], 4294966784 }
 0x333   :  { %478 = vsyncpa [#allocation3], 1 }
 0x334   :  { %479 = vsyncpa [#allocation6], 1 }
 0x335   :  { %480 = vsyncpa [#allocation4], 1 }

</bundles_post_ra>
